<compile_context>
chip_gen: v6e
topology: v6e:2x2x1
jax: 0.10.0
libtpu: 0.0.40
codegen_flags: <defaults>
</compile_context>

<pallas_src>
import jax
import jax.numpy as jnp
from jax.experimental import pallas as pl
from jax.experimental.pallas import tpu as pltpu

F_PAD = 128  # lane-dense internal feature width (hidden units / output slab)


# ----------------------------------------------------------------------------
# small helpers
# ----------------------------------------------------------------------------
def _round_up(x: int, m: int) -> int:
    return ((x + m - 1) // m) * m


def _cdiv(a: int, b: int) -> int:
    return -(-a // b)


def _device_kind() -> str:
    try:
        return jax.devices()[0].device_kind.lower()
    except Exception:
        return ""


def _default_bf16_elementwise() -> bool:
    # bf16 VPU exists on v6e / v7x; keep f32 elementwise on v5e and older.
    kind = _device_kind()
    return ("v6" in kind) or ("v7" in kind)


def _default_min_grid_steps() -> int:
    # v7x has 2 TensorCores; give the "parallel" batch axis >= 8 steps so it
    # can shard across them with several steps per core.  Single-TC chips pay
    # only ~0.35us/step, so 2 steps is plenty there.
    return 8 if "v7" in _device_kind() else 2


def _choose_batch_tiling(batch: int, tile_b_max: int, min_steps: int):
    """Pick (tile_b, b_pad): tile_b % 8 == 0, bounded padding waste, and (when
    enough rows exist) at least `min_steps` grid steps."""
    b8 = _round_up(max(batch, 1), 8)
    tile = max(8, min(_round_up(tile_b_max, 8), b8))
    steps = _cdiv(b8, tile)
    if b8 >= min_steps * 8:
        steps = max(steps, min_steps)
    tile = _round_up(_cdiv(b8, steps), 8)     # waste bounded by ~8 rows/step
    steps = _cdiv(b8, tile)
    return tile, steps * tile


# ----------------------------------------------------------------------------
# kernel
# ----------------------------------------------------------------------------
def _bias_relu(acc_f32, bias_row_f32, bf16_elementwise):
    """Bias add + ReLU returning a bf16 operand for the next matmul."""
    if bf16_elementwise:
        h = acc_f32.astype(jnp.bfloat16) + bias_row_f32.astype(jnp.bfloat16)
        return jnp.maximum(h, 0.0)
    return jnp.maximum(acc_f32 + bias_row_f32, 0.0).astype(jnp.bfloat16)


def _make_kernel(num_layers: int, n_streams: int, bf16_elementwise: bool):
    """Whole-MLP kernel for a fixed layer count and number of input streams."""
    assert num_layers >= 2

    def kernel(*refs):
        s_refs = refs[:n_streams]                 # each (TILE_B, width_i) f32
        w0_refs = refs[n_streams:2 * n_streams]   # each (width_i, F_PAD) bf16
        wrest_ref = refs[2 * n_streams]           # (L-1, F_PAD, F_PAD) bf16
        b_ref = refs[2 * n_streams + 1]           # (L, F_PAD) f32
        o_ref = refs[2 * n_streams + 2]           # (TILE_B, F_PAD) f32

        # Layer 0: cat([x, u, cond]) @ W0 == sum_s  s @ W0[rows(s)]
        # (concat + 128-lane padding fused into the MXU; no xcat slab).
        acc = jnp.dot(s_refs[0][...].astype(jnp.bfloat16), w0_refs[0][...],
                      preferred_element_type=jnp.float32)
        for si in range(1, n_streams):
            acc = acc + jnp.dot(s_refs[si][...].astype(jnp.bfloat16),
                                w0_refs[si][...],
                                preferred_element_type=jnp.float32)
        h = _bias_relu(acc, b_ref[0:1, :], bf16_elementwise)

        # Hidden + output layers from the stacked, VMEM-resident weights.
        for li in range(1, num_layers):
            acc = jnp.dot(h, wrest_ref[li - 1], preferred_element_type=jnp.float32)
            if li < num_layers - 1:
                h = _bias_relu(acc, b_ref[li:li + 1, :], bf16_elementwise)
            else:
                # Final bias add in f32; lane-dense unmasked store.  The skip
                # connection (+x) is fused into the wrapper's output slice.
                o_ref[...] = acc + b_ref[li:li + 1, :]

    return kernel


# ----------------------------------------------------------------------------
# wrapper
# ----------------------------------------------------------------------------
def simple_odenet_forward(t, x, u, cond, params, *, tile_b=4096,
                          bf16_elementwise=None, min_grid_steps=None):
    """JAX wrapper mirroring SimpleODENet.forward with skip=True (t unused).

    x: (B, n) f32, u: (B, m) f32 or None, cond: (B, C) f32 or None.
    params: list of (W, b) with W stored as (in, out) = W_pytorch.T, b (out,).
    """
    del t  # time does not enter the network
    B, n = x.shape

    streams = [x]
    for extra in (u, cond):
        if extra is not None and extra.shape[-1] > 0:
            streams.append(extra)
    widths = [int(s.shape[-1]) for s in streams]
    in_dim = sum(widths)

    num_layers = len(params)
    assert num_layers >= 2, "SimpleODENet always has >= 2 Linear layers"
    w0 = params[0][0]
    assert w0.shape[0] == in_dim
    assert all(w.shape[1] <= F_PAD for w, _ in params)
    assert all(w.shape[0] <= F_PAD for w, _ in params[1:])

    if bf16_elementwise is None:
        bf16_elementwise = _default_bf16_elementwise()
    if min_grid_steps is None:
        min_grid_steps = _default_min_grid_steps()

    tile, b_pad = _choose_batch_tiling(B, tile_b, min_grid_steps)
    grid = (b_pad // tile,)

    # Batch-pad the narrow activation streams; lane-pad each to a multiple of
    # 8 so the layer-0 contractions are sublane aligned.  No (B,128) xcat slab
    # is ever written to HBM.
    streams_p, w0_slices = [], []
    off = 0
    for s, wd in zip(streams, widths):
        wd8 = _round_up(wd, 8)
        streams_p.append(jnp.pad(s.astype(jnp.float32),
                                 ((0, b_pad - B), (0, wd8 - wd))))
        blk = w0[off:off + wd, :].astype(jnp.float32)          # (wd, H)
        blk = jnp.pad(blk, ((0, wd8 - wd), (0, F_PAD - blk.shape[1])))
        w0_slices.append(blk.astype(jnp.bfloat16))             # (wd8, F_PAD)
        off += wd

    wrest = jnp.stack([
        jnp.pad(w.astype(jnp.float32),
                ((0, F_PAD - w.shape[0]), (0, F_PAD - w.shape[1])))
        for w, _ in params[1:]
    ]).astype(jnp.bfloat16)                                    # (L-1, 128, 128)
    bstack = jnp.stack([
        jnp.pad(jnp.reshape(b, (-1,)).astype(jnp.float32), (0, F_PAD - b.size))
        for _, b in params
    ])                                                         # (L, 128) f32

    in_specs = (
        [pl.BlockSpec((tile, s.shape[-1]), lambda i: (i, 0)) for s in streams_p]
        + [pl.BlockSpec(ws.shape, lambda i: (0, 0)) for ws in w0_slices]
        + [pl.BlockSpec(wrest.shape, lambda i: (0, 0, 0)),
           pl.BlockSpec(bstack.shape, lambda i: (0, 0))]
    )
    out_spec = pl.BlockSpec((tile, F_PAD), lambda i: (i, 0))

    bytes_accessed = (sum(s.size * 4 for s in streams_p)
                      + sum(ws.size * 2 for ws in w0_slices)
                      + wrest.size * 2 + bstack.size * 4
                      + b_pad * F_PAD * 4)
    cost = pl.CostEstimate(flops=2 * b_pad * F_PAD * F_PAD * num_layers,
                           transcendentals=0, bytes_accessed=bytes_accessed)

    net_out = pl.pallas_call(
        _make_kernel(num_layers, len(streams_p), bf16_elementwise),
        out_shape=jax.ShapeDtypeStruct((b_pad, F_PAD), jnp.float32),
        grid_spec=pltpu.PrefetchScalarGridSpec(
            num_scalar_prefetch=0,
            grid=grid,
            in_specs=in_specs,
            out_specs=out_spec,
        ),
        compiler_params=pltpu.CompilerParams(
            dimension_semantics=("parallel",)),
        cost_estimate=cost,
    )(*streams_p, *w0_slices, wrest, bstack)

    # skip=True: dx/dt = x + net(cat(x,u,cond)).  Residual stays exact f32 and
    # fuses with the (already required) output slice/cast — no kernel pass.
    return (x.astype(jnp.float32) + net_out[:B, :n]).astype(x.dtype)


# ----------------------------------------------------------------------------
# parameter init and pure-JAX references
# ----------------------------------------------------------------------------
def init_params(key, in_dim, hidden_units, hidden_layers, out_dim):
    """Kaiming-normal (fan_out, relu) weights, zero biases — like the PyTorch init.

    Returned weights are stored as (in, out) = W_pytorch.T for the kernel.
    """
    dims = [in_dim] + [hidden_units] * (hidden_layers + 1) + [out_dim]
    params = []
    for i in range(len(dims) - 1):
        key, sub = jax.random.split(key)
        fan_in, fan_out = dims[i], dims[i + 1]
        std = (2.0 / fan_out) ** 0.5  # kaiming_normal_, mode='fan_out', relu
        w = std * jax.random.normal(sub, (fan_in, fan_out), dtype=jnp.float32)
        b = jnp.zeros((fan_out,), dtype=jnp.float32)
        params.append((w, b))
    return params


def reference_forward(t, x, u, cond, params):
    """Pure-JAX f32 reference (semantic spec of the PyTorch module)."""
    del t
    h = jnp.concatenate([x, u, cond], axis=-1)
    for i, (w, b) in enumerate(params):
        h = h @ w + b.reshape(1, -1)
        if i < len(params) - 1:
            h = jnp.maximum(h, 0.0)
    return x + h  # skip=True


def reference_forward_bf16(t, x, u, cond, params, bf16_elementwise=False):
    """Pure-JAX reference mirroring the kernel's mixed-precision arithmetic."""
    del t
    h = jnp.concatenate([x, u, cond], axis=-1).astype(jnp.bfloat16)
    num_layers = len(params)
    out = None
    for i, (w, b) in enumerate(params):
        acc = jnp.dot(h, w.astype(jnp.bfloat16), preferred_element_type=jnp.float32)
        brow = b.reshape(1, -1)
        if i < num_layers - 1:
            if bf16_elementwise:
                h = jnp.maximum(acc.astype(jnp.bfloat16) + brow.astype(jnp.bfloat16), 0.0)
            else:
                h = jnp.maximum(acc + brow, 0.0).astype(jnp.bfloat16)
        else:
            out = acc + brow
    return x + out


# ----------------------------------------------------------------------------
# demo / self-test
# ----------------------------------------------------------------------------
if __name__ == "__main__":
    # Small shapes consistent with the module's (B, X) state convention.
    B, n, m, C = 2, 8, 4, 0
    hidden_units, hidden_layers = 32, 2

    key = jax.random.PRNGKey(0)
    kx, ku, kp = jax.random.split(key, 3)

    t = jnp.zeros((1,), dtype=jnp.float32)
    x = jax.random.normal(kx, (B, n), dtype=jnp.float32)
    u = jax.random.normal(ku, (B, m), dtype=jnp.float32)
    cond = jnp.zeros((B, C), dtype=jnp.float32)

    params = init_params(kp, in_dim=n + m + C, hidden_units=hidden_units,
                         hidden_layers=hidden_layers, out_dim=n)

    out = simple_odenet_forward(t, x, u, cond, params)
    out = jax.block_until_ready(out)

    ew = _default_bf16_elementwise()
    ref_mixed = reference_forward_bf16(t, x, u, cond, params, bf16_elementwise=ew)
    ref_f32 = reference_forward(t, x, u, cond, params)

    assert out.shape == (B, n)
    assert jnp.allclose(out, ref_mixed, atol=2e-3, rtol=2e-3), \
        "mismatch vs mixed-precision JAX reference"
    assert jnp.allclose(out, ref_f32, atol=5e-2, rtol=5e-2), \
        "mismatch vs f32 JAX reference"

    print("KERNEL_OK")
</pallas_src>

<mosaic_0001>
module attributes {stable_mosaic.version = 11 : i64} {
  func.func @kernel(%arg0: i32, %arg1: memref<8x8xf32, #tpu.memory_space<vmem>>, %arg2: memref<8x8xf32, #tpu.memory_space<vmem>>, %arg3: memref<8x128xbf16, #tpu.memory_space<vmem>>, %arg4: memref<8x128xbf16, #tpu.memory_space<vmem>>, %arg5: memref<3x128x128xbf16, #tpu.memory_space<vmem>>, %arg6: memref<4x128xf32, #tpu.memory_space<vmem>>, %arg7: memref<8x128xf32, #tpu.memory_space<vmem>>) attributes {dimension_semantics = [#tpu.dimension_semantics<parallel>], iteration_bounds = array<i64: 1>, scalar_prefetch = 0 : i64, scratch_operands = 0 : i64, tpu.core_type = #tpu.core_type<tc>, window_params = [{transform_indices = @transform_0, window_bounds = array<i64: 8, 8>}, {transform_indices = @transform_1, window_bounds = array<i64: 8, 8>}, {pipeline_mode = #tpu.pipeline_mode<synchronous>, transform_indices = @transform_2, window_bounds = array<i64: 8, 128>}, {pipeline_mode = #tpu.pipeline_mode<synchronous>, transform_indices = @transform_3, window_bounds = array<i64: 8, 128>}, {pipeline_mode = #tpu.pipeline_mode<synchronous>, transform_indices = @transform_4, window_bounds = array<i64: 3, 128, 128>}, {pipeline_mode = #tpu.pipeline_mode<synchronous>, transform_indices = @transform_5, window_bounds = array<i64: 4, 128>}, {transform_indices = @transform_6, window_bounds = array<i64: 8, 128>}]} {
    %c0 = arith.constant 0 : index
    %c0_0 = arith.constant 0 : index
    %0 = vector.load %arg1[%c0, %c0_0] : memref<8x8xf32, #tpu.memory_space<vmem>>, vector<8x8xf32>
    %1 = arith.truncf %0 : vector<8x8xf32> to vector<8x8xbf16>
    %c0_1 = arith.constant 0 : index
    %c0_2 = arith.constant 0 : index
    %2 = vector.load %arg3[%c0_1, %c0_2] : memref<8x128xbf16, #tpu.memory_space<vmem>>, vector<8x128xbf16>
    %cst = arith.constant dense<0.000000e+00> : vector<8x128xf32>
    %3 = tpu.matmul %1, %2, %cst {dimension_numbers = #tpu.dot_dimension_numbers<[1], [0], [0], [1], [0, 0, 1, 1], [], []>} : vector<8x8xbf16>, vector<8x128xbf16>, vector<8x128xf32> -> vector<8x128xf32>
    %c0_3 = arith.constant 0 : index
    %c0_4 = arith.constant 0 : index
    %4 = vector.load %arg2[%c0_3, %c0_4] : memref<8x8xf32, #tpu.memory_space<vmem>>, vector<8x8xf32>
    %5 = arith.truncf %4 : vector<8x8xf32> to vector<8x8xbf16>
    %c0_5 = arith.constant 0 : index
    %c0_6 = arith.constant 0 : index
    %6 = vector.load %arg4[%c0_5, %c0_6] : memref<8x128xbf16, #tpu.memory_space<vmem>>, vector<8x128xbf16>
    %cst_7 = arith.constant dense<0.000000e+00> : vector<8x128xf32>
    %7 = tpu.matmul %5, %6, %cst_7 {dimension_numbers = #tpu.dot_dimension_numbers<[1], [0], [0], [1], [0, 0, 1, 1], [], []>} : vector<8x8xbf16>, vector<8x128xbf16>, vector<8x128xf32> -> vector<8x128xf32>
    %8 = arith.addf %3, %7 : vector<8x128xf32>
    %c0_8 = arith.constant 0 : index
    %c0_9 = arith.constant 0 : index
    %9 = vector.load %arg6[%c0_8, %c0_9] : memref<4x128xf32, #tpu.memory_space<vmem>>, vector<1x128xf32>
    %10 = vector.broadcast %9 : vector<1x128xf32> to vector<8x128xf32>
    %11 = arith.addf %8, %10 : vector<8x128xf32>
    %cst_10 = arith.constant 0.000000e+00 : f32
    %12 = vector.broadcast %cst_10 : f32 to vector<8x128xf32>
    %13 = arith.maximumf %11, %12 : vector<8x128xf32>
    %14 = arith.truncf %13 : vector<8x128xf32> to vector<8x128xbf16>
    %c0_11 = arith.constant 0 : index
    %c0_12 = arith.constant 0 : index
    %c0_13 = arith.constant 0 : index
    %15 = vector.load %arg5[%c0_11, %c0_12, %c0_13] : memref<3x128x128xbf16, #tpu.memory_space<vmem>>, vector<1x128x128xbf16>
    %16 = vector.shape_cast %15 : vector<1x128x128xbf16> to vector<128x128xbf16>
    %cst_14 = arith.constant dense<0.000000e+00> : vector<8x128xf32>
    %17 = tpu.matmul %14, %16, %cst_14 {dimension_numbers = #tpu.dot_dimension_numbers<[1], [0], [0], [1], [0, 0, 1, 1], [], []>} : vector<8x128xbf16>, vector<128x128xbf16>, vector<8x128xf32> -> vector<8x128xf32>
    %c1 = arith.constant 1 : index
    %c0_15 = arith.constant 0 : index
    %18 = vector.load %arg6[%c1, %c0_15] : memref<4x128xf32, #tpu.memory_space<vmem>>, vector<1x128xf32>
    %19 = vector.broadcast %18 : vector<1x128xf32> to vector<8x128xf32>
    %20 = arith.addf %17, %19 : vector<8x128xf32>
    %cst_16 = arith.constant 0.000000e+00 : f32
    %21 = vector.broadcast %cst_16 : f32 to vector<8x128xf32>
    %22 = arith.maximumf %20, %21 : vector<8x128xf32>
    %23 = arith.truncf %22 : vector<8x128xf32> to vector<8x128xbf16>
    %c1_17 = arith.constant 1 : index
    %c0_18 = arith.constant 0 : index
    %c0_19 = arith.constant 0 : index
    %24 = vector.load %arg5[%c1_17, %c0_18, %c0_19] : memref<3x128x128xbf16, #tpu.memory_space<vmem>>, vector<1x128x128xbf16>
    %25 = vector.shape_cast %24 : vector<1x128x128xbf16> to vector<128x128xbf16>
    %cst_20 = arith.constant dense<0.000000e+00> : vector<8x128xf32>
    %26 = tpu.matmul %23, %25, %cst_20 {dimension_numbers = #tpu.dot_dimension_numbers<[1], [0], [0], [1], [0, 0, 1, 1], [], []>} : vector<8x128xbf16>, vector<128x128xbf16>, vector<8x128xf32> -> vector<8x128xf32>
    %c2 = arith.constant 2 : index
    %c0_21 = arith.constant 0 : index
    %27 = vector.load %arg6[%c2, %c0_21] : memref<4x128xf32, #tpu.memory_space<vmem>>, vector<1x128xf32>
    %28 = vector.broadcast %27 : vector<1x128xf32> to vector<8x128xf32>
    %29 = arith.addf %26, %28 : vector<8x128xf32>
    %cst_22 = arith.constant 0.000000e+00 : f32
    %30 = vector.broadcast %cst_22 : f32 to vector<8x128xf32>
    %31 = arith.maximumf %29, %30 : vector<8x128xf32>
    %32 = arith.truncf %31 : vector<8x128xf32> to vector<8x128xbf16>
    %c2_23 = arith.constant 2 : index
    %c0_24 = arith.constant 0 : index
    %c0_25 = arith.constant 0 : index
    %33 = vector.load %arg5[%c2_23, %c0_24, %c0_25] : memref<3x128x128xbf16, #tpu.memory_space<vmem>>, vector<1x128x128xbf16>
    %34 = vector.shape_cast %33 : vector<1x128x128xbf16> to vector<128x128xbf16>
    %cst_26 = arith.constant dense<0.000000e+00> : vector<8x128xf32>
    %35 = tpu.matmul %32, %34, %cst_26 {dimension_numbers = #tpu.dot_dimension_numbers<[1], [0], [0], [1], [0, 0, 1, 1], [], []>} : vector<8x128xbf16>, vector<128x128xbf16>, vector<8x128xf32> -> vector<8x128xf32>
    %c3 = arith.constant 3 : index
    %c0_27 = arith.constant 0 : index
    %36 = vector.load %arg6[%c3, %c0_27] : memref<4x128xf32, #tpu.memory_space<vmem>>, vector<1x128xf32>
    %37 = vector.broadcast %36 : vector<1x128xf32> to vector<8x128xf32>
    %38 = arith.addf %35, %37 : vector<8x128xf32>
    %c0_28 = arith.constant 0 : index
    %c0_29 = arith.constant 0 : index
    %39 = vector.load %arg7[%c0_28, %c0_29] : memref<8x128xf32, #tpu.memory_space<vmem>>, vector<8x128xf32>
    tpu.vector_store %arg7[%c0_28, %c0_29], %38 {strides = array<i32>} : memref<8x128xf32, #tpu.memory_space<vmem>>, vector<8x128xf32>,
    return
  }
  func.func @transform_0(%arg0: i32) -> (i32, i32) {
    %c0_i32 = arith.constant 0 : i32
    %c0_i32_0 = arith.constant 0 : i32
    return %arg0, %c0_i32 : i32, i32
  }
  func.func @transform_1(%arg0: i32) -> (i32, i32) {
    %c0_i32 = arith.constant 0 : i32
    %c0_i32_0 = arith.constant 0 : i32
    return %arg0, %c0_i32 : i32, i32
  }
  func.func @transform_2(%arg0: i32) -> (i32, i32) {
    %c0_i32 = arith.constant 0 : i32
    %c0_i32_0 = arith.constant 0 : i32
    %c0_i32_1 = arith.constant 0 : i32
    return %c0_i32, %c0_i32_0 : i32, i32
  }
  func.func @transform_3(%arg0: i32) -> (i32, i32) {
    %c0_i32 = arith.constant 0 : i32
    %c0_i32_0 = arith.constant 0 : i32
    %c0_i32_1 = arith.constant 0 : i32
    return %c0_i32, %c0_i32_0 : i32, i32
  }
  func.func @transform_4(%arg0: i32) -> (i32, i32, i32) {
    %c0_i32 = arith.constant 0 : i32
    %c0_i32_0 = arith.constant 0 : i32
    %c0_i32_1 = arith.constant 0 : i32
    %c0_i32_2 = arith.constant 0 : i32
    return %c0_i32, %c0_i32_0, %c0_i32_1 : i32, i32, i32
  }
  func.func @transform_5(%arg0: i32) -> (i32, i32) {
    %c0_i32 = arith.constant 0 : i32
    %c0_i32_0 = arith.constant 0 : i32
    %c0_i32_1 = arith.constant 0 : i32
    return %c0_i32, %c0_i32_0 : i32, i32
  }
  func.func @transform_6(%arg0: i32) -> (i32, i32) {
    %c0_i32 = arith.constant 0 : i32
    %c0_i32_0 = arith.constant 0 : i32
    return %arg0, %c0_i32 : i32, i32
  }
}

</mosaic_0001>

<bundles_post_ra>
// kernel: tpu_custom_call.1
= control target key start
LH: loop header
LB: loop body
LE: loop exit
PB: predicated region body
PF: predicated region fallthrough
CT: control target
= control target key end

     0   :  { %11 = vsyncpa [#allocation3], 0  ;;  %s919_s0 = inlined_call_operand.hbm [shape: f32[8,8], index: 0, kind: input, shape index: {}]   ;;  %s920_s1 = inlined_call_operand.hbm [shape: f32[8,8], index: 1, kind: input, shape index: {}]   ;;  %s921_s2 = inlined_call_operand.hbm [shape: bf16[8,128], index: 2, kind: input, shape index: {}]   ;;  %s922_s3 = inlined_call_operand.vmem [shape: bf16[8,128], index: 3, kind: input, shape index: {}]   ;;  %s923_s4 = inlined_call_operand.hbm [shape: bf16[3,128,128], index: 4, kind: input, shape index: {}]   ;;  %s924_s5 = inlined_call_operand.vmem [shape: f32[4,128], index: 5, kind: input, shape index: {}]   ;;  %s925_s6 = inlined_call_operand.hbm [shape: f32[8,128], index: 6, kind: output, shape index: {}]  }
   0x1   :  { %12 = vsyncpa [#allocation6], 0 }
   0x2   :  { %13 = vsyncpa [#allocation9], 0 }
   0x3   :  { %14 = vsyncpa [#allocation4], 0  ;;  %s807_s21 = smov [#allocation5]   ;;  %s808_s23 = smov [#allocation2]  }
   0x4   :  { %s31_s22 = sshll.u32 %s807_s21, 4  ;;  %s21_s24 = sshll.u32 %s808_s23, 4  ;;  %s32_s22 = int_to_ptr.vmem [resolvable:$true] %s31_s22  ;;  %s22_s24 = int_to_ptr.vmem [resolvable:$true] %s21_s24 }
   0x5   :  { %s707_s25 = scalar_lea.vmem %s32_s22, 128  ;;  %p712_p1 = scmp.lt.s32.totalorder %s32_s22, %s32_s22 }
   0x6   :  { %p708_p0 = scmp.ne.s32.totalorder %s32_s22, %s707_s25  ;;  %p713_p2 = scmp.lt.s32.totalorder %s707_s25, %s707_s25 }
   0x8   :  { %p714_p3 = por %p713_p2, %p712_p1 }
   0xa   :  { %p715_p4 = pnand %p714_p3, %p708_p0 }
   0xc   :  { %718 = shalt.err (!%p715_p4)
}
   0xd   :  { %34 = dma.hbm_to_vmem [thread:$0]  %s920_s1, 128, %s32_s22, [#allocation6]  }
   0xe   :  { %s727_s28 = scalar_lea.vmem %s22_s24, 128  ;;  %p732_p6 = scmp.lt.s32.totalorder %s22_s24, %s22_s24 }
   0xf   :  { %p728_p5 = scmp.ne.s32.totalorder %s22_s24, %s727_s28  ;;  %p733_p7 = scmp.lt.s32.totalorder %s727_s28, %s727_s28 }
  0x11   :  { %p734_p8 = por %p733_p7, %p732_p6 }
  0x13   :  { %p735_p9 = pnand %p734_p8, %p728_p5 }
  0x15   :  { %738 = shalt.err (!%p735_p9)
}
  0x16   :  { %24 = dma.hbm_to_vmem [thread:$0]  %s919_s0, 128, %s22_s24, [#allocation3]  }
  0x17   :  { %s809_s7 = smov [#allocation7]   ;;  %s810_s9 = smov [#allocation8]  }
  0x18   :  { %s41_s8 = sshll.u32 %s809_s7, 4  ;;  %s52_s10 = sshll.u32 %s810_s9, 4  ;;  %s42_s8 = int_to_ptr.vmem [resolvable:$true] %s41_s8  ;;  %s53_s10 = int_to_ptr.vmem [resolvable:$true] %s52_s10 }
  0x19   :  { %s747_s11 = scalar_lea.vmem %s42_s8, 64  ;;  %p752_p11 = scmp.lt.s32.totalorder %s42_s8, %s42_s8 }
  0x1a   :  { %p748_p10 = scmp.ne.s32.totalorder %s42_s8, %s747_s11  ;;  %p753_p12 = scmp.lt.s32.totalorder %s747_s11, %s747_s11 }
  0x1c   :  { %p754_p13 = por %p753_p12, %p752_p11 }
  0x1e   :  { %p755_p0 = pnand %p754_p13, %p748_p10 }
  0x20   :  { %758 = shalt.err (!%p755_p0)
}
  0x21   :  { %44 = dma.hbm_to_vmem [thread:$0]  %s921_s2, 64, %s42_s8, [#allocation6]  }
  0x22   :  { %s767_s13 = scalar_lea.vmem %s53_s10, 3072  ;;  %p772_p2 = scmp.lt.s32.totalorder %s53_s10, %s53_s10 }
  0x23   :  { %p768_p1 = scmp.ne.s32.totalorder %s53_s10, %s767_s13  ;;  %p773_p3 = scmp.lt.s32.totalorder %s767_s13, %s767_s13 }
  0x25   :  { %p774_p4 = por %p773_p3, %p772_p2 }
  0x27   :  { %p775_p5 = pnand %p774_p4, %p768_p1 }
  0x29   :  { %778 = shalt.err (!%p775_p5)
}
  0x2a   :  { %s811_s0 = smov 64   ;;  %s812_s14 = smov 4  }
  0x2b   :  { %58 = dma.hbm_to_vmem [thread:$0]  %s923_s4, 3072, %s53_s10, [#allocation9], %s811_s0, %s811_s0, %s812_s14  }
  0x2c   :  { %799 = dma.done.wait [#allocation3], 128  }
  0x2d   :  { %800 = vsyncadd [#allocation3], 4294967168 }
  0x2e   :  { %801 = dma.done.wait [#allocation6], 192  }
  0x2f   :  { %802 = vsyncadd [#allocation6], 4294967104 }
  0x30   :  { %803 = dma.done.wait [#allocation9], 3072  }
  0x31   :  { %804 = vsyncadd [#allocation9], 4294964224  ;;  %v813_v0 = vmov 0.0   ;;  %vm814_vm0 = vmmov 0   ;;  %vm84_vm1 = vcmask 1043456   ;;  %v77_v3 = vld [vmem:[#allocation5] sm:$0xff] }
  0x32   :  { %594 = vmatprep.subr.bf16.mxu1 %v813_v0  ;;  %596 = vmatprep.mubr.msk.bf16.mxu1 %vm814_vm0, %v813_v0  ;;  %v76_v1 = vld [vmem:[#allocation7] sm:$0xf]  ;;  %v79_v2 = vld [vmem:[%s922_s3] sm:$0xf]  ;;  %v78_v5 = vpack.c.bf16 %v77_v3, %v77_v3  ;;  %vm80_vm2 = vcmask 64512   ;;  %v676_v8 = vld [vmem:[#allocation8 + $0x30] sm:$0xff]  }
  0x33   :  { %606 = vmatprep.subr.bf16.mxu0 %v813_v0  ;;  %622 = vmatprep.mubr.msk.bf16.mxu0 %vm814_vm0, %v813_v0  ;;  %v86_v4 = vsel %vm84_vm1, %v79_v2, 0  ;;  %v675_v6 = vld [vmem:[#allocation8 + $0x38] sm:$0xff]   ;;  %v132_v7 = vsel %vm84_vm1, %v76_v1, 0  ;;  %v74_v9 = vld [vmem:[#allocation2] sm:$0xff]  ;;  %v678_v12 = vld [vmem:[#allocation8 + $0x20] sm:$0xff]   ;;  %s815_s24 = smov [#allocation10]  }
  0x34   :  { %595 = vmatpush3.bf16.msra.mxu1 %v86_v4  ;;  %607 = vmatpush3.bf16.msra.mxu0 %v675_v6  ;;  %v677_v10 = vld [vmem:[#allocation8 + $0x28] sm:$0xff]   ;;  %v75_v11 = vpack.c.bf16 %v74_v9, %v74_v9  ;;  %v679_v13 = vld [vmem:[#allocation8 + $0x18] sm:$0xff]   ;;  %v680_v14 = vld [vmem:[#allocation8 + $0x10] sm:$0xff]   ;;  %s522_s25 = sshll.u32 %s815_s24, 4  ;;  %s523_s25 = int_to_ptr.vmem [resolvable:$true] %s522_s25 }
  0x35   :  { %600 = vmatprep.subr.bf16.mxu1 %v813_v0  ;;  %608 = vmatprep.subr.bf16.mxu0 %v813_v0  ;;  %v681_v15 = vld [vmem:[#allocation8 + $0x8] sm:$0xff]   ;;  %v682_v16 = vld [vmem:[#allocation8] sm:$0xff]   ;;  %v683_v17 = vld [vmem:[#allocation8 + $0x78] sm:$0xff]   ;;  %s779_s26 = scalar_lea.vmem %s523_s25, 128  ;;  %p784_p7 = scmp.lt.s32.totalorder %s523_s25, %s523_s25 }
  0x36   :  { %v684_v18 = vld [vmem:[#allocation8 + $0x70] sm:$0xff]   ;;  %v685_v19 = vld [vmem:[#allocation8 + $0x68] sm:$0xff]   ;;  %v686_v20 = vld [vmem:[#allocation8 + $0x60] sm:$0xff]   ;;  %p780_p6 = scmp.ne.s32.totalorder %s523_s25, %s779_s26  ;;  %p785_p8 = scmp.lt.s32.totalorder %s779_s26, %s779_s26 }
  0x37   :  { %597 = vmatmul.mubr.msk.bf16.vlgmr.msra.gmra.mxu1 %vm80_vm2, %v78_v5  ;;  %v687_v21 = vld [vmem:[#allocation8 + $0x58] sm:$0xff]   ;;  %v688_v22 = vld [vmem:[#allocation8 + $0x50] sm:$0xff]   ;;  %v535_v28 = vld [vmem:[%s924_s5] ss:$0 sm:$0xff] }
  0x38   :  { %601 = vmatpush3.bf16.msra.mxu1 %v132_v7  ;;  %602 = vmatprep.mubr.msk.bf16.mxu1 %vm814_vm0, %v813_v0  ;;  %v689_v36 = vld [vmem:[#allocation8 + $0x48] sm:$0xff]   ;;  %v690_v37 = vld [vmem:[#allocation8 + $0x40] sm:$0xff]   ;;  %v691_v38 = vld [vmem:[#allocation8 + $0xb8] sm:$0xff]   ;;  %p786_p9 = por %p785_p8, %p784_p7 }
  0x39   :  { %609 = vmatpush3.bf16.msra.mxu0 %v676_v8  ;;  %626 = vmatprep.subr.bf16.mxu1 %v813_v0  ;;  %v692_v39 = vld [vmem:[#allocation8 + $0xb0] sm:$0xff]   ;;  %v693_v40 = vld [vmem:[#allocation8 + $0xa8] sm:$0xff]   ;;  %v694_v41 = vld [vmem:[#allocation8 + $0xa0] sm:$0xff]  }
  0x3a   :  { %610 = vmatprep.subr.bf16.mxu0 %v813_v0  ;;  %v695_v42 = vld [vmem:[#allocation8 + $0x98] sm:$0xff]   ;;  %v696_v43 = vld [vmem:[#allocation8 + $0x90] sm:$0xff]   ;;  %v536_v44 = vld [vmem:[%s924_s5 + $0x1] ss:$0 sm:$0xff]  ;;  %p787_p10 = pnand %p786_p9, %p780_p6 }
  0x3b   :  { %v697_v52 = vld [vmem:[#allocation8 + $0x88] sm:$0xff]   ;;  %v698_v53 = vld [vmem:[#allocation8 + $0x80] sm:$0xff]  }
  0x3c   :  { %v545_v54 = vld [vmem:[%s924_s5 + $0x2] ss:$0 sm:$0xff]  ;;  %v554_v62 = vld [vmem:[%s924_s5 + $0x3] ss:$0 sm:$0xff] }
  0x3d   :  { %611 = vmatpush3.bf16.msra.mxu0 %v677_v10 }
  0x3e   :  { %612 = vmatprep.subr.bf16.mxu0 %v813_v0 }
  0x3f   :  { %603 = vmatmul.mubr.msk.bf16.vlgmr.msra.gmra.mxu1 %vm80_vm2, %v75_v11 }
  0x40   :  { %642 = vmatprep.mubr.msk.bf16.mxu1 %vm814_vm0, %v813_v0  ;;  %627 = vmatpush3.bf16.msra.mxu1 %v683_v17 }
  0x41   :  { %613 = vmatpush3.bf16.msra.mxu0 %v678_v12  ;;  %628 = vmatprep.subr.bf16.mxu1 %v813_v0 }
  0x42   :  { %614 = vmatprep.subr.bf16.mxu0 %v813_v0 }
  0x44   :  { %629 = vmatpush3.bf16.msra.mxu1 %v684_v18 }
  0x45   :  { %615 = vmatpush3.bf16.msra.mxu0 %v679_v13  ;;  %630 = vmatprep.subr.bf16.mxu1 %v813_v0 }
  0x46   :  { %616 = vmatprep.subr.bf16.mxu0 %v813_v0 }
  0x48   :  { %631 = vmatpush3.bf16.msra.mxu1 %v685_v19 }
  0x49   :  { %617 = vmatpush3.bf16.msra.mxu0 %v680_v14  ;;  %632 = vmatprep.subr.bf16.mxu1 %v813_v0 }
  0x4a   :  { %618 = vmatprep.subr.bf16.mxu0 %v813_v0 }
  0x4c   :  { %633 = vmatpush3.bf16.msra.mxu1 %v686_v20 }
  0x4d   :  { %619 = vmatpush3.bf16.msra.mxu0 %v681_v15  ;;  %634 = vmatprep.subr.bf16.mxu1 %v813_v0 }
  0x4e   :  { %620 = vmatprep.subr.bf16.mxu0 %v813_v0 }
  0x50   :  { %635 = vmatpush3.bf16.msra.mxu1 %v687_v21 }
  0x51   :  { %621 = vmatpush3.bf16.msra.mxu0 %v682_v16  ;;  %636 = vmatprep.subr.bf16.mxu1 %v813_v0 }
  0x52   :  { %646 = vmatprep.subr.bf16.mxu0 %v813_v0 }
  0x54   :  { %637 = vmatpush3.bf16.msra.mxu1 %v688_v22 }
  0x55   :  { %638 = vmatprep.subr.bf16.mxu1 %v813_v0 }
  0x58   :  { %639 = vmatpush3.bf16.msra.mxu1 %v689_v36 }
  0x59   :  { %640 = vmatprep.subr.bf16.mxu1 %v813_v0 }
  0x5c   :  { %641 = vmatpush3.bf16.msra.mxu1 %v690_v37 }
  0xf7   :  { %v122_v23 = vpop.f32.mrf.mxu1 }
  0xf9   :  { %v598_v24 = vpop.f32.mrf.mxu1 }
  0xfb   :  { %v125_v25 = vpop.f32.mrf.mxu1 }
  0xfd   :  { %v599_v26 = vpop.f32.mrf.mxu1 }
  0xff   :  { %v168_v27 = vpop.f32.mrf.mxu1 }
 0x100   :  { %v169_v29 = vadd.f32 %v168_v27, %v122_v23 }
 0x101   :  { %v604_v30 = vpop.f32.mrf.mxu1 }
 0x102   :  { %v179_v31 = vadd.f32 %v535_v28, %v169_v29 }
 0x103   :  { %v171_v32 = vpop.f32.mrf.mxu1 }
 0x104   :  { %v180_v33 = vmax.f32 %v179_v31, 0.0 }
 0x105   :  { %v605_v34 = vpop.f32.mrf.mxu1 }
 0x106   :  { %v181_v35 = vpack.c.bf16 %v180_v33, %v180_v33 }
 0x108   :  { %623 = vmatmul.mubr.bf16.vlgmr.msra.gmra.mxu0 %v181_v35 }
 0x109   :  { %662 = vmatprep.mubr.msk.bf16.mxu0 %vm814_vm0, %v813_v0  ;;  %647 = vmatpush3.bf16.msra.mxu0 %v691_v38 }
 0x10a   :  { %648 = vmatprep.subr.bf16.mxu0 %v813_v0 }
 0x10d   :  { %649 = vmatpush3.bf16.msra.mxu0 %v692_v39 }
 0x10e   :  { %650 = vmatprep.subr.bf16.mxu0 %v813_v0 }
 0x111   :  { %651 = vmatpush3.bf16.msra.mxu0 %v693_v40 }
 0x112   :  { %652 = vmatprep.subr.bf16.mxu0 %v813_v0 }
 0x115   :  { %653 = vmatpush3.bf16.msra.mxu0 %v694_v41 }
 0x116   :  { %654 = vmatprep.subr.bf16.mxu0 %v813_v0 }
 0x119   :  { %655 = vmatpush3.bf16.msra.mxu0 %v695_v42 }
 0x11a   :  { %656 = vmatprep.subr.bf16.mxu0 %v813_v0 }
 0x11d   :  { %657 = vmatpush3.bf16.msra.mxu0 %v696_v43 }
 0x11e   :  { %658 = vmatprep.subr.bf16.mxu0 %v813_v0 }
 0x121   :  { %659 = vmatpush3.bf16.msra.mxu0 %v697_v52 }
 0x122   :  { %660 = vmatprep.subr.bf16.mxu0 %v813_v0 }
 0x125   :  { %661 = vmatpush3.bf16.msra.mxu0 %v698_v53 }
 0x1c8   :  { %v285_v45 = vpop.f32.mrf.mxu0 }
 0x1c9   :  { %v286_v46 = vadd.f32 %v536_v44, %v285_v45 }
 0x1ca   :  { %v624_v47 = vpop.f32.mrf.mxu0 }
 0x1cb   :  { %v291_v48 = vmax.f32 %v286_v46, 0.0 }
 0x1cc   :  { %v288_v49 = vpop.f32.mrf.mxu0 }
 0x1cd   :  { %v292_v50 = vpack.c.bf16 %v291_v48, %v291_v48 }
 0x1ce   :  { %v625_v51 = vpop.f32.mrf.mxu0 }
 0x1cf   :  { %643 = vmatmul.mubr.bf16.vlgmr.msra.gmra.mxu1 %v292_v50 }
 0x28f   :  { %v397_v55 = vpop.f32.mrf.mxu1 }
 0x290   :  { %v398_v56 = vadd.f32 %v545_v54, %v397_v55 }
 0x291   :  { %v644_v57 = vpop.f32.mrf.mxu1 }
 0x292   :  { %v403_v58 = vmax.f32 %v398_v56, 0.0 }
 0x293   :  { %v400_v59 = vpop.f32.mrf.mxu1 }
 0x294   :  { %v404_v60 = vpack.c.bf16 %v403_v58, %v403_v58 }
 0x295   :  { %v645_v61 = vpop.f32.mrf.mxu1 }
 0x296   :  { %663 = vmatmul.mubr.bf16.vlgmr.msra.gmra.mxu0 %v404_v60 }
 0x356   :  { %v509_v63 = vpop.f32.mrf.mxu0 }
 0x357   :  { %v510_v0 = vadd.f32 %v554_v62, %v509_v63 }
 0x358   :  { %v664_v1 = vpop.f32.mrf.mxu0 }
 0x359   :  { %515 = vst [vmem:[#allocation10] sm:$0xff] %v510_v0 }
 0x35a   :  { %v512_v2 = vpop.f32.mrf.mxu0 }
 0x35b   :  { %790 = shalt.err (!%p787_p10)
}
 0x35c   :  { %525 = dma.vmem_to_hbm [thread:$0]  %s523_s25, 128, %s925_s6, [#allocation4]   ;;  %v665_v3 = vpop.f32.mrf.mxu0 }
 0x35d   :  { %805 = dma.done.wait [#allocation4], 128  }
 0x35e   :  { %806 = vsyncadd [#allocation4], 4294967168 }
 0x35f   :  { %529 = vsyncpa [#allocation3], 1 }
 0x360   :  { %530 = vsyncpa [#allocation6], 1 }
 0x361   :  { %531 = vsyncpa [#allocation9], 1 }
 0x362   :  { %532 = vsyncpa [#allocation4], 1 }

</bundles_post_ra>
